<compile_context>
chip_gen: v7x
topology: tpu7x:2x2x1
jax: 0.10.0
libtpu: 0.0.40
codegen_flags: <defaults>
</compile_context>

<pallas_src>
import jax
import jax.numpy as jnp
from jax.experimental import pallas as pl
from jax.experimental.pallas import tpu as pltpu


def _round_up(x, m):
    return ((x + m - 1) // m) * m


def _fused_emb_mean_kernel(ids_ref, table_ref, out_ref):
    """One batch tile: mean embeddings of every feature via a single matmul.

    ids_ref:   (TB, Lt) int32 VMEM -- ids pre-shifted into the packed vocab axis
    table_ref: (Vp, Ep) bf16  VMEM -- block-diagonal packed tables, 1/L_f folded in
    out_ref:   (TB, Ep) f32   VMEM -- lanes [f*E:(f+1)*E) = feature f's mean
    """
    ids = ids_ref[...]                                   # (TB, Lt)
    tb, lt = ids.shape
    vp = table_ref.shape[0]

    # Hoisted lane iota over the packed vocab axis (JAX does not CSE broadcasts).
    vocab_iota = jax.lax.broadcasted_iota(jnp.int32, (tb, vp), 1)

    # Build the count matrix with a 2-D accumulator instead of materializing a
    # (TB, Lt, Vp) tensor: per id slot, lane-broadcast that id column and
    # compare against the vocab iota.  Lt is a small, static block dimension,
    # so a fully-unrolled loop keeps every slice index static.
    counts = jnp.zeros((tb, vp), jnp.float32)
    for l in range(lt):
        hit = ids[:, l:l + 1] == vocab_iota              # (TB, Vp) bool
        counts = counts + hit.astype(jnp.float32)

    # 1/L_f already lives in the table rows, so counts are plain hit counts
    # (exact small integers -> exact in bf16).  One MXU pass produces every
    # feature's mean embedding at once.
    out_ref[...] = jnp.dot(counts.astype(table_ref.dtype), table_ref[...],
                           preferred_element_type=jnp.float32)


def fused_embedding_mean(ids, packed_table, *, batch_tile=256):
    """ids: (B, Lt) int32 (pre-offset), packed_table: (Vp, Ep) bf16/f32."""
    B, Lt = ids.shape
    Vp, Ep = packed_table.shape

    tb = min(_round_up(B, 8), batch_tile)
    Bp = _round_up(B, tb)
    # Guarantee >=2 grid steps whenever the batch allows it so the "parallel"
    # axis can shard across v7x's two TensorCores (no-op on v5e/v6e).
    if Bp // tb < 2 and tb > 8:
        tb = max(8, _round_up(tb // 2, 8))
        Bp = _round_up(B, tb)
    if Bp != B:
        ids = jnp.pad(ids, ((0, Bp - B), (0, 0)))   # padded rows discarded below
    grid = (Bp // tb,)

    table_bytes = Vp * Ep * packed_table.dtype.itemsize
    vmem_bytes = (2 * tb * Lt * 4        # ids tile (double-buffered)
                  + table_bytes          # packed table (resident, single buffer)
                  + 2 * tb * Ep * 4      # output tile (double-buffered)
                  + tb * Vp * 4          # counts accumulator
                  + (4 << 20))           # headroom for vregs / layout copies
    vmem_limit = int(min(max(vmem_bytes, 16 << 20), 64 << 20))

    def build(table_spec):
        return pl.pallas_call(
            _fused_emb_mean_kernel,
            out_shape=jax.ShapeDtypeStruct((Bp, Ep), jnp.float32),
            grid=grid,
            in_specs=[
                pl.BlockSpec((tb, Lt), lambda i: (i, 0)),   # batch tile of ids
                table_spec,                                  # packed table
            ],
            out_specs=pl.BlockSpec((tb, Ep), lambda i: (i, 0)),
            compiler_params=pltpu.CompilerParams(
                dimension_semantics=("parallel",),
                vmem_limit_bytes=vmem_limit,
            ),
        )

    try:
        # Constant index_map => the table never changes across the grid; one
        # buffer is enough and halves its VMEM footprint (key on v7x, 64 MiB).
        out = build(pl.BlockSpec((Vp, Ep), lambda i: (0, 0),
                                 pipeline_mode=pl.Buffered(1)))(ids, packed_table)
    except Exception:
        # Fallback for JAX builds without per-operand buffer-count support.
        out = build(pl.BlockSpec((Vp, Ep), lambda i: (0, 0)))(ids, packed_table)
    return out[:B]


class EmbeddingLayer:
    """JAX/Pallas port of scarabs EmbeddingLayer (synthetic weights)."""

    def __init__(self, features, embedding_size, key):
        self.features = features
        self.embedding_size = embedding_size
        self.feature_names = list(features.keys())

        # Unique embedding tables (torch.nn.init.normal_(std=1e-4)).
        self.tables = {}
        keys = jax.random.split(key, len(features))
        for i, (name, feature) in enumerate(features.items()):
            if feature["shared_embed_name"] is not None:
                continue
            vocab_size = len(feature["vocab"])
            self.tables[name] = 0.0001 * jax.random.normal(
                keys[i], (vocab_size, embedding_size), dtype=jnp.float32)

        # Row offsets into the packed (block-diagonal) vocab axis.
        self.row_offset = {}
        self.vocab_size = {}
        off = 0
        for name, feature in features.items():
            tbl_name = (name if feature["shared_embed_name"] is None
                        else feature["shared_embed_name"])
            v = self.tables[tbl_name].shape[0]
            self.row_offset[name] = off
            self.vocab_size[name] = v
            off += v
        self.total_vocab = off
        # Vocab axis only needs 128 alignment (one-hot cost is linear in Vp);
        # lane axis padded to 128 for unmasked, lane-dense output stores.
        self.padded_rows = _round_up(max(off, 8), 128)
        self.padded_cols = _round_up(
            max(len(self.feature_names) * embedding_size, 128), 128)

        # Packed bf16 tables with 1/L_f folded in, cached per id-list-length
        # tuple so the scaling/packing work is done once, not per call.
        self._packed_cache = {}
        # NOTE: shared tables are physically duplicated per feature (values
        # identical -> forward semantics unchanged; only a concern for autodiff).

    def _packed_table(self, lens):
        key = tuple(lens)
        cached = self._packed_cache.get(key)
        if cached is not None:
            return cached
        E = self.embedding_size
        packed = jnp.zeros((self.padded_rows, self.padded_cols), jnp.float32)
        for f, name in enumerate(self.feature_names):
            feature = self.features[name]
            tbl_name = (name if feature["shared_embed_name"] is None
                        else feature["shared_embed_name"])
            tbl = self.tables[tbl_name] * (1.0 / lens[f])   # fold 1/L_f in
            r0 = self.row_offset[name]
            c0 = f * E
            packed = packed.at[r0:r0 + tbl.shape[0], c0:c0 + E].set(tbl)
        packed = packed.astype(jnp.bfloat16)   # halve VMEM/DMA, native MXU rate
        self._packed_cache[key] = packed
        return packed

    def __call__(self, **kwargs):
        E = self.embedding_size
        ids_parts, lens = [], []
        for name in self.feature_names:
            ids = kwargs[name].astype(jnp.int32)
            lens.append(ids.shape[1])
            # Clamp to the valid vocab range: torch would raise on OOB ids; we
            # clamp so no id can silently select the wrong packed-table block.
            ids = jnp.clip(ids, 0, self.vocab_size[name] - 1)
            ids_parts.append(ids + self.row_offset[name])
        ids_cat = jnp.concatenate(ids_parts, axis=1)        # (B, Lt)

        packed_out = fused_embedding_mean(ids_cat, self._packed_table(lens))
        return {name: packed_out[:, f * E:(f + 1) * E]
                for f, name in enumerate(self.feature_names)}


if __name__ == "__main__":
    embedding_size = 8
    batch = 2

    features = {
        "user_id":      {"vocab": list(range(50)), "shared_embed_name": None},
        "item_id":      {"vocab": list(range(40)), "shared_embed_name": None},
        "hist_item_id": {"vocab": list(range(40)), "shared_embed_name": "item_id"},
        "category":     {"vocab": list(range(16)), "shared_embed_name": None},
    }
    seq_lens = {"user_id": 1, "item_id": 1, "hist_item_id": 8, "category": 3}

    key = jax.random.PRNGKey(0)
    layer_key, data_key = jax.random.split(key)
    layer = EmbeddingLayer(features, embedding_size, layer_key)

    inputs = {}
    data_keys = jax.random.split(data_key, len(features))
    for k, (name, feature) in zip(data_keys, features.items()):
        inputs[name] = jax.random.randint(
            k, (batch, seq_lens[name]), 0, len(feature["vocab"]), dtype=jnp.int32)

    outputs = layer(**inputs)
    for v in outputs.values():
        jax.block_until_ready(v)

    # Sanity check against a pure-JAX f32 reference of the same semantics
    # (embedding lookup followed by mean over dim=1, shared tables honoured).
    # Tolerance loosened for the bf16 packed table (std=1e-4 -> abs err ~1e-6).
    for name, feature in features.items():
        table_name = (name if feature["shared_embed_name"] is None
                      else feature["shared_embed_name"])
        ref = jnp.mean(layer.tables[table_name][inputs[name]], axis=1)
        assert outputs[name].shape == (batch, embedding_size)
        assert jnp.allclose(outputs[name], ref, atol=2e-6, rtol=1e-2)

    print("KERNEL_OK")
</pallas_src>

<mosaic_0001>
module attributes {stable_mosaic.version = 11 : i64} {
  func.func @_fused_emb_mean_kernel(%arg0: i32, %arg1: memref<8x13xi32, #tpu.memory_space<vmem>>, %arg2: memref<256x128xbf16, #tpu.memory_space<vmem>>, %arg3: memref<8x128xf32, #tpu.memory_space<vmem>>) attributes {dimension_semantics = [#tpu.dimension_semantics<parallel>], iteration_bounds = array<i64: 1>, scalar_prefetch = 0 : i64, scratch_operands = 0 : i64, tpu.core_type = #tpu.core_type<tc>, window_params = [{transform_indices = @transform_0, window_bounds = array<i64: 8, 13>}, {pipeline_mode = #tpu.pipeline_mode<synchronous>, transform_indices = @transform_1, window_bounds = array<i64: 256, 128>}, {transform_indices = @transform_2, window_bounds = array<i64: 8, 128>}]} {
    %c0 = arith.constant 0 : index
    %c0_0 = arith.constant 0 : index
    %0 = vector.load %arg1[%c0, %c0_0] : memref<8x13xi32, #tpu.memory_space<vmem>>, vector<8x13xi32>
    %1 = tpu.iota {dimensions = array<i32: 1>} : vector<8x256xi32>
    %cst = arith.constant 0.000000e+00 : f32
    %2 = vector.broadcast %cst : f32 to vector<8x256xf32>
    %3 = vector.extract_strided_slice %0 {offsets = [0, 0], sizes = [8, 1], strides = [1, 1]} : vector<8x13xi32> to vector<8x1xi32>
    %4 = vector.broadcast %3 : vector<8x1xi32> to vector<8x256xi32>
    %5 = arith.cmpi eq, %4, %1 : vector<8x256xi32>
    %6 = arith.extui %5 : vector<8x256xi1> to vector<8x256xi32>
    %7 = arith.sitofp %6 : vector<8x256xi32> to vector<8x256xf32>
    %8 = arith.addf %2, %7 : vector<8x256xf32>
    %9 = vector.extract_strided_slice %0 {offsets = [0, 1], sizes = [8, 1], strides = [1, 1]} : vector<8x13xi32> to vector<8x1xi32>
    %10 = vector.broadcast %9 : vector<8x1xi32> to vector<8x256xi32>
    %11 = arith.cmpi eq, %10, %1 : vector<8x256xi32>
    %12 = arith.extui %11 : vector<8x256xi1> to vector<8x256xi32>
    %13 = arith.sitofp %12 : vector<8x256xi32> to vector<8x256xf32>
    %14 = arith.addf %8, %13 : vector<8x256xf32>
    %15 = vector.extract_strided_slice %0 {offsets = [0, 2], sizes = [8, 1], strides = [1, 1]} : vector<8x13xi32> to vector<8x1xi32>
    %16 = vector.broadcast %15 : vector<8x1xi32> to vector<8x256xi32>
    %17 = arith.cmpi eq, %16, %1 : vector<8x256xi32>
    %18 = arith.extui %17 : vector<8x256xi1> to vector<8x256xi32>
    %19 = arith.sitofp %18 : vector<8x256xi32> to vector<8x256xf32>
    %20 = arith.addf %14, %19 : vector<8x256xf32>
    %21 = vector.extract_strided_slice %0 {offsets = [0, 3], sizes = [8, 1], strides = [1, 1]} : vector<8x13xi32> to vector<8x1xi32>
    %22 = vector.broadcast %21 : vector<8x1xi32> to vector<8x256xi32>
    %23 = arith.cmpi eq, %22, %1 : vector<8x256xi32>
    %24 = arith.extui %23 : vector<8x256xi1> to vector<8x256xi32>
    %25 = arith.sitofp %24 : vector<8x256xi32> to vector<8x256xf32>
    %26 = arith.addf %20, %25 : vector<8x256xf32>
    %27 = vector.extract_strided_slice %0 {offsets = [0, 4], sizes = [8, 1], strides = [1, 1]} : vector<8x13xi32> to vector<8x1xi32>
    %28 = vector.broadcast %27 : vector<8x1xi32> to vector<8x256xi32>
    %29 = arith.cmpi eq, %28, %1 : vector<8x256xi32>
    %30 = arith.extui %29 : vector<8x256xi1> to vector<8x256xi32>
    %31 = arith.sitofp %30 : vector<8x256xi32> to vector<8x256xf32>
    %32 = arith.addf %26, %31 : vector<8x256xf32>
    %33 = vector.extract_strided_slice %0 {offsets = [0, 5], sizes = [8, 1], strides = [1, 1]} : vector<8x13xi32> to vector<8x1xi32>
    %34 = vector.broadcast %33 : vector<8x1xi32> to vector<8x256xi32>
    %35 = arith.cmpi eq, %34, %1 : vector<8x256xi32>
    %36 = arith.extui %35 : vector<8x256xi1> to vector<8x256xi32>
    %37 = arith.sitofp %36 : vector<8x256xi32> to vector<8x256xf32>
    %38 = arith.addf %32, %37 : vector<8x256xf32>
    %39 = vector.extract_strided_slice %0 {offsets = [0, 6], sizes = [8, 1], strides = [1, 1]} : vector<8x13xi32> to vector<8x1xi32>
    %40 = vector.broadcast %39 : vector<8x1xi32> to vector<8x256xi32>
    %41 = arith.cmpi eq, %40, %1 : vector<8x256xi32>
    %42 = arith.extui %41 : vector<8x256xi1> to vector<8x256xi32>
    %43 = arith.sitofp %42 : vector<8x256xi32> to vector<8x256xf32>
    %44 = arith.addf %38, %43 : vector<8x256xf32>
    %45 = vector.extract_strided_slice %0 {offsets = [0, 7], sizes = [8, 1], strides = [1, 1]} : vector<8x13xi32> to vector<8x1xi32>
    %46 = vector.broadcast %45 : vector<8x1xi32> to vector<8x256xi32>
    %47 = arith.cmpi eq, %46, %1 : vector<8x256xi32>
    %48 = arith.extui %47 : vector<8x256xi1> to vector<8x256xi32>
    %49 = arith.sitofp %48 : vector<8x256xi32> to vector<8x256xf32>
    %50 = arith.addf %44, %49 : vector<8x256xf32>
    %51 = vector.extract_strided_slice %0 {offsets = [0, 8], sizes = [8, 1], strides = [1, 1]} : vector<8x13xi32> to vector<8x1xi32>
    %52 = vector.broadcast %51 : vector<8x1xi32> to vector<8x256xi32>
    %53 = arith.cmpi eq, %52, %1 : vector<8x256xi32>
    %54 = arith.extui %53 : vector<8x256xi1> to vector<8x256xi32>
    %55 = arith.sitofp %54 : vector<8x256xi32> to vector<8x256xf32>
    %56 = arith.addf %50, %55 : vector<8x256xf32>
    %57 = vector.extract_strided_slice %0 {offsets = [0, 9], sizes = [8, 1], strides = [1, 1]} : vector<8x13xi32> to vector<8x1xi32>
    %58 = vector.broadcast %57 : vector<8x1xi32> to vector<8x256xi32>
    %59 = arith.cmpi eq, %58, %1 : vector<8x256xi32>
    %60 = arith.extui %59 : vector<8x256xi1> to vector<8x256xi32>
    %61 = arith.sitofp %60 : vector<8x256xi32> to vector<8x256xf32>
    %62 = arith.addf %56, %61 : vector<8x256xf32>
    %63 = vector.extract_strided_slice %0 {offsets = [0, 10], sizes = [8, 1], strides = [1, 1]} : vector<8x13xi32> to vector<8x1xi32>
    %64 = vector.broadcast %63 : vector<8x1xi32> to vector<8x256xi32>
    %65 = arith.cmpi eq, %64, %1 : vector<8x256xi32>
    %66 = arith.extui %65 : vector<8x256xi1> to vector<8x256xi32>
    %67 = arith.sitofp %66 : vector<8x256xi32> to vector<8x256xf32>
    %68 = arith.addf %62, %67 : vector<8x256xf32>
    %69 = vector.extract_strided_slice %0 {offsets = [0, 11], sizes = [8, 1], strides = [1, 1]} : vector<8x13xi32> to vector<8x1xi32>
    %70 = vector.broadcast %69 : vector<8x1xi32> to vector<8x256xi32>
    %71 = arith.cmpi eq, %70, %1 : vector<8x256xi32>
    %72 = arith.extui %71 : vector<8x256xi1> to vector<8x256xi32>
    %73 = arith.sitofp %72 : vector<8x256xi32> to vector<8x256xf32>
    %74 = arith.addf %68, %73 : vector<8x256xf32>
    %75 = vector.extract_strided_slice %0 {offsets = [0, 12], sizes = [8, 1], strides = [1, 1]} : vector<8x13xi32> to vector<8x1xi32>
    %76 = vector.broadcast %75 : vector<8x1xi32> to vector<8x256xi32>
    %77 = arith.cmpi eq, %76, %1 : vector<8x256xi32>
    %78 = arith.extui %77 : vector<8x256xi1> to vector<8x256xi32>
    %79 = arith.sitofp %78 : vector<8x256xi32> to vector<8x256xf32>
    %80 = arith.addf %74, %79 : vector<8x256xf32>
    %81 = arith.truncf %80 : vector<8x256xf32> to vector<8x256xbf16>
    %c0_1 = arith.constant 0 : index
    %c0_2 = arith.constant 0 : index
    %82 = vector.load %arg2[%c0_1, %c0_2] : memref<256x128xbf16, #tpu.memory_space<vmem>>, vector<256x128xbf16>
    %cst_3 = arith.constant dense<0.000000e+00> : vector<8x128xf32>
    %83 = tpu.matmul %81, %82, %cst_3 {dimension_numbers = #tpu.dot_dimension_numbers<[1], [0], [0], [1], [0, 0, 1, 1], [], []>} : vector<8x256xbf16>, vector<256x128xbf16>, vector<8x128xf32> -> vector<8x128xf32>
    %c0_4 = arith.constant 0 : index
    %c0_5 = arith.constant 0 : index
    %84 = vector.load %arg3[%c0_4, %c0_5] : memref<8x128xf32, #tpu.memory_space<vmem>>, vector<8x128xf32>
    tpu.vector_store %arg3[%c0_4, %c0_5], %83 {strides = array<i32>} : memref<8x128xf32, #tpu.memory_space<vmem>>, vector<8x128xf32>,
    return
  }
  func.func @transform_0(%arg0: i32) -> (i32, i32) {
    %c0_i32 = arith.constant 0 : i32
    %c0_i32_0 = arith.constant 0 : i32
    return %arg0, %c0_i32 : i32, i32
  }
  func.func @transform_1(%arg0: i32) -> (i32, i32) {
    %c0_i32 = arith.constant 0 : i32
    %c0_i32_0 = arith.constant 0 : i32
    %c0_i32_1 = arith.constant 0 : i32
    return %c0_i32, %c0_i32_0 : i32, i32
  }
  func.func @transform_2(%arg0: i32) -> (i32, i32) {
    %c0_i32 = arith.constant 0 : i32
    %c0_i32_0 = arith.constant 0 : i32
    return %arg0, %c0_i32 : i32, i32
  }
}

module attributes {stable_mosaic.version = 11 : i64} {
  func.func @_fused_emb_mean_kernel(%arg0: i32, %arg1: memref<8x13xi32, #tpu.memory_space<vmem>>, %arg2: memref<256x128xbf16, #tpu.memory_space<vmem>>, %arg3: memref<8x128xf32, #tpu.memory_space<vmem>>) attributes {dimension_semantics = [#tpu.dimension_semantics<parallel>], iteration_bounds = array<i64: 1>, scalar_prefetch = 0 : i64, scratch_operands = 0 : i64, tpu.core_type = #tpu.core_type<tc>, window_params = [{transform_indices = @transform_0, window_bounds = array<i64: 8, 13>}, {pipeline_mode = #tpu.pipeline_mode<synchronous>, transform_indices = @transform_1, window_bounds = array<i64: 256, 128>}, {transform_indices = @transform_2, window_bounds = array<i64: 8, 128>}]} {
    %c0 = arith.constant 0 : index
    %c0_0 = arith.constant 0 : index
    %0 = vector.load %arg1[%c0, %c0_0] : memref<8x13xi32, #tpu.memory_space<vmem>>, vector<8x13xi32>
    %1 = tpu.iota {dimensions = array<i32: 1>} : vector<8x256xi32>
    %cst = arith.constant 0.000000e+00 : f32
    %2 = vector.broadcast %cst : f32 to vector<8x256xf32>
    %3 = vector.extract_strided_slice %0 {offsets = [0, 0], sizes = [8, 1], strides = [1, 1]} : vector<8x13xi32> to vector<8x1xi32>
    %4 = vector.broadcast %3 : vector<8x1xi32> to vector<8x256xi32>
    %5 = arith.cmpi eq, %4, %1 : vector<8x256xi32>
    %6 = arith.extui %5 : vector<8x256xi1> to vector<8x256xi32>
    %7 = arith.sitofp %6 : vector<8x256xi32> to vector<8x256xf32>
    %8 = arith.addf %2, %7 : vector<8x256xf32>
    %9 = vector.extract_strided_slice %0 {offsets = [0, 1], sizes = [8, 1], strides = [1, 1]} : vector<8x13xi32> to vector<8x1xi32>
    %10 = vector.broadcast %9 : vector<8x1xi32> to vector<8x256xi32>
    %11 = arith.cmpi eq, %10, %1 : vector<8x256xi32>
    %12 = arith.extui %11 : vector<8x256xi1> to vector<8x256xi32>
    %13 = arith.sitofp %12 : vector<8x256xi32> to vector<8x256xf32>
    %14 = arith.addf %8, %13 : vector<8x256xf32>
    %15 = vector.extract_strided_slice %0 {offsets = [0, 2], sizes = [8, 1], strides = [1, 1]} : vector<8x13xi32> to vector<8x1xi32>
    %16 = vector.broadcast %15 : vector<8x1xi32> to vector<8x256xi32>
    %17 = arith.cmpi eq, %16, %1 : vector<8x256xi32>
    %18 = arith.extui %17 : vector<8x256xi1> to vector<8x256xi32>
    %19 = arith.sitofp %18 : vector<8x256xi32> to vector<8x256xf32>
    %20 = arith.addf %14, %19 : vector<8x256xf32>
    %21 = vector.extract_strided_slice %0 {offsets = [0, 3], sizes = [8, 1], strides = [1, 1]} : vector<8x13xi32> to vector<8x1xi32>
    %22 = vector.broadcast %21 : vector<8x1xi32> to vector<8x256xi32>
    %23 = arith.cmpi eq, %22, %1 : vector<8x256xi32>
    %24 = arith.extui %23 : vector<8x256xi1> to vector<8x256xi32>
    %25 = arith.sitofp %24 : vector<8x256xi32> to vector<8x256xf32>
    %26 = arith.addf %20, %25 : vector<8x256xf32>
    %27 = vector.extract_strided_slice %0 {offsets = [0, 4], sizes = [8, 1], strides = [1, 1]} : vector<8x13xi32> to vector<8x1xi32>
    %28 = vector.broadcast %27 : vector<8x1xi32> to vector<8x256xi32>
    %29 = arith.cmpi eq, %28, %1 : vector<8x256xi32>
    %30 = arith.extui %29 : vector<8x256xi1> to vector<8x256xi32>
    %31 = arith.sitofp %30 : vector<8x256xi32> to vector<8x256xf32>
    %32 = arith.addf %26, %31 : vector<8x256xf32>
    %33 = vector.extract_strided_slice %0 {offsets = [0, 5], sizes = [8, 1], strides = [1, 1]} : vector<8x13xi32> to vector<8x1xi32>
    %34 = vector.broadcast %33 : vector<8x1xi32> to vector<8x256xi32>
    %35 = arith.cmpi eq, %34, %1 : vector<8x256xi32>
    %36 = arith.extui %35 : vector<8x256xi1> to vector<8x256xi32>
    %37 = arith.sitofp %36 : vector<8x256xi32> to vector<8x256xf32>
    %38 = arith.addf %32, %37 : vector<8x256xf32>
    %39 = vector.extract_strided_slice %0 {offsets = [0, 6], sizes = [8, 1], strides = [1, 1]} : vector<8x13xi32> to vector<8x1xi32>
    %40 = vector.broadcast %39 : vector<8x1xi32> to vector<8x256xi32>
    %41 = arith.cmpi eq, %40, %1 : vector<8x256xi32>
    %42 = arith.extui %41 : vector<8x256xi1> to vector<8x256xi32>
    %43 = arith.sitofp %42 : vector<8x256xi32> to vector<8x256xf32>
    %44 = arith.addf %38, %43 : vector<8x256xf32>
    %45 = vector.extract_strided_slice %0 {offsets = [0, 7], sizes = [8, 1], strides = [1, 1]} : vector<8x13xi32> to vector<8x1xi32>
    %46 = vector.broadcast %45 : vector<8x1xi32> to vector<8x256xi32>
    %47 = arith.cmpi eq, %46, %1 : vector<8x256xi32>
    %48 = arith.extui %47 : vector<8x256xi1> to vector<8x256xi32>
    %49 = arith.sitofp %48 : vector<8x256xi32> to vector<8x256xf32>
    %50 = arith.addf %44, %49 : vector<8x256xf32>
    %51 = vector.extract_strided_slice %0 {offsets = [0, 8], sizes = [8, 1], strides = [1, 1]} : vector<8x13xi32> to vector<8x1xi32>
    %52 = vector.broadcast %51 : vector<8x1xi32> to vector<8x256xi32>
    %53 = arith.cmpi eq, %52, %1 : vector<8x256xi32>
    %54 = arith.extui %53 : vector<8x256xi1> to vector<8x256xi32>
    %55 = arith.sitofp %54 : vector<8x256xi32> to vector<8x256xf32>
    %56 = arith.addf %50, %55 : vector<8x256xf32>
    %57 = vector.extract_strided_slice %0 {offsets = [0, 9], sizes = [8, 1], strides = [1, 1]} : vector<8x13xi32> to vector<8x1xi32>
    %58 = vector.broadcast %57 : vector<8x1xi32> to vector<8x256xi32>
    %59 = arith.cmpi eq, %58, %1 : vector<8x256xi32>
    %60 = arith.extui %59 : vector<8x256xi1> to vector<8x256xi32>
    %61 = arith.sitofp %60 : vector<8x256xi32> to vector<8x256xf32>
    %62 = arith.addf %56, %61 : vector<8x256xf32>
    %63 = vector.extract_strided_slice %0 {offsets = [0, 10], sizes = [8, 1], strides = [1, 1]} : vector<8x13xi32> to vector<8x1xi32>
    %64 = vector.broadcast %63 : vector<8x1xi32> to vector<8x256xi32>
    %65 = arith.cmpi eq, %64, %1 : vector<8x256xi32>
    %66 = arith.extui %65 : vector<8x256xi1> to vector<8x256xi32>
    %67 = arith.sitofp %66 : vector<8x256xi32> to vector<8x256xf32>
    %68 = arith.addf %62, %67 : vector<8x256xf32>
    %69 = vector.extract_strided_slice %0 {offsets = [0, 11], sizes = [8, 1], strides = [1, 1]} : vector<8x13xi32> to vector<8x1xi32>
    %70 = vector.broadcast %69 : vector<8x1xi32> to vector<8x256xi32>
    %71 = arith.cmpi eq, %70, %1 : vector<8x256xi32>
    %72 = arith.extui %71 : vector<8x256xi1> to vector<8x256xi32>
    %73 = arith.sitofp %72 : vector<8x256xi32> to vector<8x256xf32>
    %74 = arith.addf %68, %73 : vector<8x256xf32>
    %75 = vector.extract_strided_slice %0 {offsets = [0, 12], sizes = [8, 1], strides = [1, 1]} : vector<8x13xi32> to vector<8x1xi32>
    %76 = vector.broadcast %75 : vector<8x1xi32> to vector<8x256xi32>
    %77 = arith.cmpi eq, %76, %1 : vector<8x256xi32>
    %78 = arith.extui %77 : vector<8x256xi1> to vector<8x256xi32>
    %79 = arith.sitofp %78 : vector<8x256xi32> to vector<8x256xf32>
    %80 = arith.addf %74, %79 : vector<8x256xf32>
    %81 = arith.truncf %80 : vector<8x256xf32> to vector<8x256xbf16>
    %c0_1 = arith.constant 0 : index
    %c0_2 = arith.constant 0 : index
    %82 = vector.load %arg2[%c0_1, %c0_2] : memref<256x128xbf16, #tpu.memory_space<vmem>>, vector<256x128xbf16>
    %cst_3 = arith.constant dense<0.000000e+00> : vector<8x128xf32>
    %83 = tpu.matmul %81, %82, %cst_3 {dimension_numbers = #tpu.dot_dimension_numbers<[1], [0], [0], [1], [0, 0, 1, 1], [], []>} : vector<8x256xbf16>, vector<256x128xbf16>, vector<8x128xf32> -> vector<8x128xf32>
    %c0_4 = arith.constant 0 : index
    %c0_5 = arith.constant 0 : index
    %84 = vector.load %arg3[%c0_4, %c0_5] : memref<8x128xf32, #tpu.memory_space<vmem>>, vector<8x128xf32>
    tpu.vector_store %arg3[%c0_4, %c0_5], %83 {strides = array<i32>} : memref<8x128xf32, #tpu.memory_space<vmem>>, vector<8x128xf32>,
    return
  }
  func.func @transform_0(%arg0: i32) -> (i32, i32) {
    %c0_i32 = arith.constant 0 : i32
    %c0_i32_0 = arith.constant 0 : i32
    return %arg0, %c0_i32 : i32, i32
  }
  func.func @transform_1(%arg0: i32) -> (i32, i32) {
    %c0_i32 = arith.constant 0 : i32
    %c0_i32_0 = arith.constant 0 : i32
    %c0_i32_1 = arith.constant 0 : i32
    return %c0_i32, %c0_i32_0 : i32, i32
  }
  func.func @transform_2(%arg0: i32) -> (i32, i32) {
    %c0_i32 = arith.constant 0 : i32
    %c0_i32_0 = arith.constant 0 : i32
    return %arg0, %c0_i32 : i32, i32
  }
}

</mosaic_0001>

<bundles_post_ra>
// kernel: tpu_custom_call.1
= control target key start
LH: loop header
LB: loop body
LE: loop exit
PB: predicated region body
PF: predicated region fallthrough
CT: control target
= control target key end

     0   :  { %7 = vsyncpa [#allocation3], 0  ;;  %s692_s0 = inlined_call_operand.hbm [shape: s32[8,13], index: 0, kind: input, shape index: {}]   ;;  %s693_s1 = inlined_call_operand.hbm [shape: bf16[256,128], index: 1, kind: input, shape index: {}]   ;;  %s694_s2 = inlined_call_operand.hbm [shape: f32[8,128], index: 2, kind: output, shape index: {}]  }
   0x1   :  { %8 = vsyncpa [#allocation6], 0 }
   0x2   :  { %9 = vsyncpa [#allocation4], 0  ;;  %s558_s9 = smov [#allocation2]   ;;  %s559_s11 = smov [#allocation5]  }
   0x3   :  { %s16_s10 = sshll.u32 %s558_s9, 4  ;;  %s25_s12 = sshll.u32 %s559_s11, 4  ;;  %s17_s10 = int_to_ptr.vmem [resolvable:$true] %s16_s10  ;;  %s592_s12 = int_to_ptr.vmem [resolvable:$true] %s25_s12 }
   0x4   :  { %s486_s15 = scalar_lea.hbm %s692_s0, 128 }
   0x5   :  { %p487_p0 = scmp.ne.s32.totalorder %s692_s0, %s486_s15  ;;  %p490_p1 = scmp.lt.u32.totalorder %s486_s15, %s692_s0 }
   0x7   :  { %p492_p2 = pnand %p490_p1, %p487_p0 }
   0x9   :  { %495 = shalt.err (!%p492_p2)
}
   0xa   :  { %s496_s20 = scalar_lea.vmem %s17_s10, 128  ;;  %p501_p4 = scmp.lt.s32.totalorder %s17_s10, %s17_s10 }
   0xb   :  { %p497_p3 = scmp.ne.s32.totalorder %s17_s10, %s496_s20  ;;  %p502_p5 = scmp.lt.s32.totalorder %s496_s20, %s496_s20 }
   0xd   :  { %p503_p6 = por %p502_p5, %p501_p4 }
   0xf   :  { %p504_p7 = pnand %p503_p6, %p497_p3 }
  0x11   :  { %507 = shalt.err (!%p504_p7)
}
  0x12   :  { %19 = dma.hbm_to_vmem [thread:$0]  %s692_s0, 128, %s17_s10, [#allocation3]  }
  0x13   :  { %s508_s25 = scalar_lea.hbm %s693_s1, 2048 }
  0x14   :  { %p509_p8 = scmp.ne.s32.totalorder %s693_s1, %s508_s25  ;;  %p512_p9 = scmp.lt.u32.totalorder %s508_s25, %s693_s1 }
  0x16   :  { %p514_p10 = pnand %p512_p9, %p509_p8 }
  0x18   :  { %517 = shalt.err (!%p514_p10)
}
  0x19   :  { %s518_s30 = scalar_lea.vmem %s592_s12, 2048  ;;  %p523_p12 = scmp.lt.s32.totalorder %s592_s12, %s592_s12 }
  0x1a   :  { %p519_p11 = scmp.ne.s32.totalorder %s592_s12, %s518_s30  ;;  %p524_p13 = scmp.lt.s32.totalorder %s518_s30, %s518_s30 }
  0x1c   :  { %p525_p0 = por %p524_p13, %p523_p12 }
  0x1e   :  { %p526_p1 = pnand %p525_p0, %p519_p11 }
  0x20   :  { %529 = shalt.err (!%p526_p1)
}
  0x21   :  { %s560_s0 = smov 64   ;;  %s561_s3 = smov 4  }
  0x22   :  { %31 = dma.hbm_to_vmem [thread:$0]  %s693_s1, 2048, %s592_s12, [#allocation6], %s560_s0, %s560_s0, %s561_s3  }
  0x23   :  { %552 = dma.done.wait [#allocation3], 128  }
  0x24   :  { %553 = vsyncadd [#allocation3], 4294967168 }
  0x25   :  { %554 = dma.done.wait [#allocation6], 2048  }
  0x26   :  { %555 = vsyncadd [#allocation6], 4294965248  ;;  %v562_v0 = vmov 2   ;;  %v563_v1 = vmov 0   ;;  %v39_v2 = vld [vmem:[#allocation2] sm:$0xff]  ;;  %v564_v3 = vmov 3   ;;  %v40_v30 = vlaneseq }
  0x27   :  { %458 = vset.pattern.permute.xlu1 %v562_v0  ;;  %456 = vset.pattern.permute.xlu0 %v563_v1  ;;  %v565_v4 = vmov 1   ;;  %v470_v5 = vld [vmem:[#allocation5 + $0x40] sm:$0xff]   ;;  %v566_v6 = vmov 4   ;;  %v567_v7 = vmov 5   ;;  %v472_v9 = vld [vmem:[#allocation5 + $0x48] sm:$0xff]   ;;  %v568_v11 = vmov 6  }
  0x28   :  { %66 = vperm.xlu1 %458, %v39_v2   ;;  %44 = vperm.xlu0 %456, %v39_v2   ;;  %v471_v8 = vld [vmem:[#allocation5] sm:$0xff]   ;;  %v473_v10 = vld [vmem:[#allocation5 + $0x8] sm:$0xff]   ;;  %v569_v12 = vmov 8   ;;  %v474_v13 = vld [vmem:[#allocation5 + $0x50] sm:$0xff]   ;;  %v570_v15 = vmov 7   ;;  %v571_v16 = vmov 11  }
  0x29   :  { %415 = vmatprep.subr.bf16.mxu0 %v470_v5  ;;  %v475_v14 = vld [vmem:[#allocation5 + $0x10] sm:$0xff]   ;;  %v476_v17 = vld [vmem:[#allocation5 + $0x58] sm:$0xff]   ;;  %v572_v19 = vmov 9   ;;  %v478_v20 = vld [vmem:[#allocation5 + $0x60] sm:$0xff]   ;;  %v573_v21 = vmov 12   ;;  %v574_v24 = vmov 10  }
  0x2a   :  { %416 = vmatpush3.bf16.msra.mxu0 %v471_v8  ;;  %v477_v18 = vld [vmem:[#allocation5 + $0x18] sm:$0xff]   ;;  %v479_v22 = vld [vmem:[#allocation5 + $0x20] sm:$0xff]   ;;  %v480_v23 = vld [vmem:[#allocation5 + $0x68] sm:$0xff]   ;;  %v623_v31 = vand.u32 127, %v40_v30  ;;  %v575_v35 = vmov 0.0   ;;  %s576_s1 = smov [#allocation7]  }
  0x2b   :  { %417 = vmatprep.subr.bf16.mxu0 %v472_v9  ;;  %v481_v25 = vld [vmem:[#allocation5 + $0x28] sm:$0xff]   ;;  %v482_v26 = vld [vmem:[#allocation5 + $0x70] sm:$0xff]   ;;  %v484_v28 = vld [vmem:[#allocation5 + $0x78] sm:$0xff]   ;;  %s363_s6 = sshll.u32 %s576_s1, 4  ;;  %s364_s6 = int_to_ptr.vmem [resolvable:$true] %s363_s6 }
  0x2c   :  { %459 = vset.pattern.permute.xlu1 %v564_v3  ;;  %457 = vset.pattern.permute.xlu0 %v565_v4  ;;  %v483_v27 = vld [vmem:[#allocation5 + $0x30] sm:$0xff]   ;;  %v485_v29 = vld [vmem:[#allocation5 + $0x38] sm:$0xff]   ;;  %v626_v32 = vadd.s32 128, %v623_v31  ;;  %s530_s7 = scalar_lea.vmem %s364_s6, 128  ;;  %p535_p3 = scmp.lt.s32.totalorder %s364_s6, %s364_s6 }
  0x2d   :  { %77 = vperm.xlu1 %459, %v39_v2   ;;  %55 = vperm.xlu0 %457, %v39_v2   ;;  %p531_p2 = scmp.ne.s32.totalorder %s364_s6, %s530_s7  ;;  %p536_p4 = scmp.lt.s32.totalorder %s530_s7, %s530_s7 }
  0x2e   :  { %418 = vmatpush3.bf16.msra.mxu0 %v473_v10 }
  0x2f   :  { %419 = vmatprep.subr.bf16.mxu0 %v474_v13  ;;  %p537_p5 = por %p536_p4, %p535_p3 }
  0x31   :  { %460 = vset.pattern.permute.xlu1 %v566_v6  ;;  %461 = vset.pattern.permute.xlu0 %v567_v7  ;;  %p538_p6 = pnand %p537_p5, %p531_p2 }
  0x32   :  { %88 = vperm.xlu1 %460, %v39_v2   ;;  %99 = vperm.xlu0 %461, %v39_v2  }
  0x33   :  { %420 = vmatpush3.bf16.msra.mxu0 %v475_v14 }
  0x34   :  { %421 = vmatprep.subr.bf16.mxu0 %v476_v17 }
  0x36   :  { %462 = vset.pattern.permute.xlu1 %v568_v11  ;;  %464 = vset.pattern.permute.xlu0 %v569_v12 }
  0x37   :  { %110 = vperm.xlu1 %462, %v39_v2   ;;  %132 = vperm.xlu0 %464, %v39_v2  }
  0x38   :  { %422 = vmatpush3.bf16.msra.mxu0 %v477_v18 }
  0x39   :  { %423 = vmatprep.subr.bf16.mxu0 %v478_v20 }
  0x3b   :  { %463 = vset.pattern.permute.xlu1 %v570_v15  ;;  %467 = vset.pattern.permute.xlu0 %v571_v16 }
  0x3c   :  { %121 = vperm.xlu1 %463, %v39_v2   ;;  %165 = vperm.xlu0 %467, %v39_v2  }
  0x3d   :  { %424 = vmatpush3.bf16.msra.mxu0 %v479_v22 }
  0x3e   :  { %425 = vmatprep.subr.bf16.mxu0 %v480_v23 }
  0x40   :  { %465 = vset.pattern.permute.xlu1 %v572_v19  ;;  %469 = vset.pattern.permute.xlu0 %v573_v21 }
  0x41   :  { %143 = vperm.xlu1 %465, %v39_v2   ;;  %426 = vmatpush3.bf16.msra.mxu0 %v481_v25 }
  0x42   :  { %427 = vmatprep.subr.bf16.mxu0 %v482_v26 }
  0x45   :  { %466 = vset.pattern.permute.xlu1 %v574_v24  ;;  %428 = vmatpush3.bf16.msra.mxu0 %v483_v27 }
  0x46   :  { %154 = vperm.xlu1 %466, %v39_v2   ;;  %429 = vmatprep.subr.bf16.mxu0 %v484_v28 }
  0x49   :  { %430 = vmatpush3.bf16.msra.mxu0 %v485_v29 }
  0x4a   :  { %468 = vset.pattern.permute.xlu1 %v573_v21 }
  0x4b   :  { %176 = vperm.xlu1 %468, %v39_v2  }
  0xa7   :  { %v67_v33 = vpop.permute.xlu1 %66  ;;  %v45_v34 = vpop.permute.xlu0 %44 }
  0xa8   :  { %vm46_vm0 = vcmp.eq.s32.totalorder %v45_v34, %v623_v31  ;;  %vm47_vm1 = vcmp.eq.s32.totalorder %v45_v34, %v626_v32  ;;  %vm68_vm2 = vcmp.eq.s32.totalorder %v67_v33, %v623_v31  ;;  %vm69_vm3 = vcmp.eq.s32.totalorder %v67_v33, %v626_v32 }
  0xa9   :  { %v373_v36 = vsel %vm46_vm0, 1.0, %v575_v35  ;;  %v374_v37 = vsel %vm47_vm1, 1.0, %v575_v35  ;;  %v377_v44 = vsel %vm68_vm2, 1.0, %v575_v35  ;;  %v378_v45 = vsel %vm69_vm3, 1.0, %v575_v35 }
  0xac   :  { %v78_v38 = vpop.permute.xlu1 %77  ;;  %v56_v39 = vpop.permute.xlu0 %55 }
  0xad   :  { %vm57_vm4 = vcmp.eq.s32.totalorder %v56_v39, %v623_v31  ;;  %vm58_vm5 = vcmp.eq.s32.totalorder %v56_v39, %v626_v32  ;;  %vm79_vm6 = vcmp.eq.s32.totalorder %v78_v38, %v623_v31  ;;  %vm80_vm7 = vcmp.eq.s32.totalorder %v78_v38, %v626_v32 }
  0xae   :  { %v375_v40 = vsel %vm57_vm4, 1.0, %v575_v35  ;;  %v376_v41 = vsel %vm58_vm5, 1.0, %v575_v35  ;;  %v379_v46 = vsel %vm79_vm6, 1.0, %v575_v35  ;;  %v380_v47 = vsel %vm80_vm7, 1.0, %v575_v35 }
  0xaf   :  { %v63_v42 = vadd.f32 %v375_v40, %v373_v36  ;;  %v64_v43 = vadd.f32 %v376_v41, %v374_v37 }
  0xb1   :  { %v74_v48 = vadd.f32 %v377_v44, %v63_v42  ;;  %v75_v49 = vadd.f32 %v378_v45, %v64_v43  ;;  %v89_v50 = vpop.permute.xlu1 %88  ;;  %v100_v51 = vpop.permute.xlu0 %99 }
  0xb2   :  { %vm90_vm8 = vcmp.eq.s32.totalorder %v89_v50, %v623_v31  ;;  %vm91_vm9 = vcmp.eq.s32.totalorder %v89_v50, %v626_v32  ;;  %vm101_vm10 = vcmp.eq.s32.totalorder %v100_v51, %v623_v31  ;;  %vm102_vm11 = vcmp.eq.s32.totalorder %v100_v51, %v626_v32 }
  0xb3   :  { %v85_v52 = vadd.f32 %v379_v46, %v74_v48  ;;  %v86_v53 = vadd.f32 %v380_v47, %v75_v49  ;;  %v381_v54 = vsel %vm90_vm8, 1.0, %v575_v35  ;;  %v382_v55 = vsel %vm91_vm9, 1.0, %v575_v35 }
  0xb4   :  { %v383_v58 = vsel %vm101_vm10, 1.0, %v575_v35  ;;  %v384_v59 = vsel %vm102_vm11, 1.0, %v575_v35 }
  0xb5   :  { %v96_v56 = vadd.f32 %v381_v54, %v85_v52  ;;  %v97_v57 = vadd.f32 %v382_v55, %v86_v53 }
  0xb6   :  { %v111_v60 = vpop.permute.xlu1 %110  ;;  %v133_v63 = vpop.permute.xlu0 %132 }
  0xb7   :  { %vm112_vm12 = vcmp.eq.s32.totalorder %v111_v60, %v623_v31  ;;  %vm113_vm13 = vcmp.eq.s32.totalorder %v111_v60, %v626_v32  ;;  %v107_v61 = vadd.f32 %v383_v58, %v96_v56  ;;  %v108_v62 = vadd.f32 %v384_v59, %v97_v57 }
  0xb8   :  { %v385_v0 = vsel %vm112_vm12, 1.0, %v575_v35  ;;  %v386_v1 = vsel %vm113_vm13, 1.0, %v575_v35  ;;  %vm134_vm14 = vcmp.eq.s32.totalorder %v133_v63, %v623_v31  ;;  %vm135_vm15 = vcmp.eq.s32.totalorder %v133_v63, %v626_v32 }
  0xb9   :  { %v118_v3 = vadd.f32 %v385_v0, %v107_v61  ;;  %v119_v4 = vadd.f32 %v386_v1, %v108_v62  ;;  %v389_v9 = vsel %vm134_vm14, 1.0, %v575_v35  ;;  %v390_v10 = vsel %vm135_vm15, 1.0, %v575_v35 }
  0xbb   :  { %v122_v2 = vpop.permute.xlu1 %121  ;;  %v166_v12 = vpop.permute.xlu0 %165 }
  0xbc   :  { %vm123_vm0 = vcmp.eq.s32.totalorder %v122_v2, %v623_v31  ;;  %vm124_vm1 = vcmp.eq.s32.totalorder %v122_v2, %v626_v32  ;;  %vm167_vm4 = vcmp.eq.s32.totalorder %v166_v12, %v623_v31  ;;  %vm168_vm5 = vcmp.eq.s32.totalorder %v166_v12, %v626_v32 }
  0xbd   :  { %v387_v5 = vsel %vm123_vm0, 1.0, %v575_v35  ;;  %v388_v6 = vsel %vm124_vm1, 1.0, %v575_v35  ;;  %v395_v22 = vsel %vm167_vm4, 1.0, %v575_v35  ;;  %v396_v23 = vsel %vm168_vm5, 1.0, %v575_v35 }
  0xbe   :  { %v129_v7 = vadd.f32 %v387_v5, %v118_v3  ;;  %v130_v8 = vadd.f32 %v388_v6, %v119_v4 }
  0xc0   :  { %v144_v11 = vpop.permute.xlu1 %143  ;;  %v140_v13 = vadd.f32 %v389_v9, %v129_v7  ;;  %v141_v14 = vadd.f32 %v390_v10, %v130_v8 }
  0xc1   :  { %vm145_vm2 = vcmp.eq.s32.totalorder %v144_v11, %v623_v31  ;;  %vm146_vm3 = vcmp.eq.s32.totalorder %v144_v11, %v626_v32 }
  0xc2   :  { %v391_v15 = vsel %vm145_vm2, 1.0, %v575_v35  ;;  %v392_v16 = vsel %vm146_vm3, 1.0, %v575_v35 }
  0xc3   :  { %v151_v18 = vadd.f32 %v391_v15, %v140_v13  ;;  %v152_v19 = vadd.f32 %v392_v16, %v141_v14 }
  0xc5   :  { %v155_v17 = vpop.permute.xlu1 %154 }
  0xc6   :  { %vm156_vm6 = vcmp.eq.s32.totalorder %v155_v17, %v623_v31  ;;  %vm157_vm7 = vcmp.eq.s32.totalorder %v155_v17, %v626_v32 }
  0xc7   :  { %v393_v20 = vsel %vm156_vm6, 1.0, %v575_v35  ;;  %v394_v21 = vsel %vm157_vm7, 1.0, %v575_v35 }
  0xc8   :  { %v162_v24 = vadd.f32 %v393_v20, %v151_v18  ;;  %v163_v25 = vadd.f32 %v394_v21, %v152_v19 }
  0xca   :  { %v173_v26 = vadd.f32 %v395_v22, %v162_v24  ;;  %v177_v27 = vpop.permute.xlu1 %176  ;;  %v174_v28 = vadd.f32 %v396_v23, %v163_v25 }
  0xcb   :  { %vm178_vm8 = vcmp.eq.s32.totalorder %v177_v27, %v623_v31  ;;  %vm179_vm9 = vcmp.eq.s32.totalorder %v177_v27, %v626_v32 }
  0xcc   :  { %v397_v29 = vsel %vm178_vm8, 1.0, %v575_v35  ;;  %v398_v30 = vsel %vm179_vm9, 1.0, %v575_v35 }
  0xcd   :  { %v184_v33 = vadd.f32 %v397_v29, %v173_v26  ;;  %v185_v34 = vadd.f32 %v398_v30, %v174_v28 }
  0xcf   :  { %v186_v36 = vpack.c.bf16 %v184_v33, %v184_v33  ;;  %v187_v37 = vpack.c.bf16 %v185_v34, %v185_v34 }
  0xd1   :  { %348 = vmatprep.mubr.bf16.mxu0 %v187_v37 }
  0xd2   :  { %349 = vmatmul.mubr.bf16.vlgmr.msra.gmra.mrb[0].mxu0 %v186_v36 }
 0x1a5   :  { %v431_v38 = vpop.f32.mrb[0].mxu0 }
 0x1a6   :  { %v432_v39 = vpop.f32.mrb[1].mxu0 }
 0x1a7   :  { %v433_v40 = vadd.f32 %v432_v39, %v431_v38  ;;  %v434_v41 = vpop.f32.mrb[2].mxu0 }
 0x1a8   :  { %v435_v31 = vpop.f32.mrb[3].mxu0 }
 0x1a9   :  { %356 = vst [vmem:[#allocation7] sm:$0xff] %v433_v40 }
 0x1aa   :  { %541 = shalt.err (!%p538_p6)
}
 0x1ab   :  { %s542_s10 = scalar_lea.hbm %s694_s2, 128 }
 0x1ac   :  { %p543_p7 = scmp.ne.s32.totalorder %s694_s2, %s542_s10  ;;  %p546_p8 = scmp.lt.u32.totalorder %s542_s10, %s694_s2 }
 0x1ae   :  { %p548_p9 = pnand %p546_p8, %p543_p7 }
 0x1b0   :  { %551 = shalt.err (!%p548_p9)
}
 0x1b1   :  { %366 = dma.vmem_to_hbm [thread:$0]  %s364_s6, 128, %s694_s2, [#allocation4]  }
 0x1b2   :  { %556 = dma.done.wait [#allocation4], 128  }
 0x1b3   :  { %557 = vsyncadd [#allocation4], 4294967168 }
 0x1b4   :  { %370 = vsyncpa [#allocation3], 1 }
 0x1b5   :  { %371 = vsyncpa [#allocation6], 1 }
 0x1b6   :  { %372 = vsyncpa [#allocation4], 1 }

// kernel: tpu_custom_call.1
= control target key start
LH: loop header
LB: loop body
LE: loop exit
PB: predicated region body
PF: predicated region fallthrough
CT: control target
= control target key end

     0   :  { %7 = vsyncpa [#allocation3], 0  ;;  %s692_s0 = inlined_call_operand.hbm [shape: s32[8,13], index: 0, kind: input, shape index: {}]   ;;  %s693_s1 = inlined_call_operand.hbm [shape: bf16[256,128], index: 1, kind: input, shape index: {}]   ;;  %s694_s2 = inlined_call_operand.hbm [shape: f32[8,128], index: 2, kind: output, shape index: {}]  }
   0x1   :  { %8 = vsyncpa [#allocation6], 0 }
   0x2   :  { %9 = vsyncpa [#allocation4], 0  ;;  %s558_s9 = smov [#allocation2]   ;;  %s559_s11 = smov [#allocation5]  }
   0x3   :  { %s16_s10 = sshll.u32 %s558_s9, 4  ;;  %s25_s12 = sshll.u32 %s559_s11, 4  ;;  %s17_s10 = int_to_ptr.vmem [resolvable:$true] %s16_s10  ;;  %s592_s12 = int_to_ptr.vmem [resolvable:$true] %s25_s12 }
   0x4   :  { %s486_s15 = scalar_lea.hbm %s692_s0, 128 }
   0x5   :  { %p487_p0 = scmp.ne.s32.totalorder %s692_s0, %s486_s15  ;;  %p490_p1 = scmp.lt.u32.totalorder %s486_s15, %s692_s0 }
   0x7   :  { %p492_p2 = pnand %p490_p1, %p487_p0 }
   0x9   :  { %495 = shalt.err (!%p492_p2)
}
   0xa   :  { %s496_s20 = scalar_lea.vmem %s17_s10, 128  ;;  %p501_p4 = scmp.lt.s32.totalorder %s17_s10, %s17_s10 }
   0xb   :  { %p497_p3 = scmp.ne.s32.totalorder %s17_s10, %s496_s20  ;;  %p502_p5 = scmp.lt.s32.totalorder %s496_s20, %s496_s20 }
   0xd   :  { %p503_p6 = por %p502_p5, %p501_p4 }
   0xf   :  { %p504_p7 = pnand %p503_p6, %p497_p3 }
  0x11   :  { %507 = shalt.err (!%p504_p7)
}
  0x12   :  { %19 = dma.hbm_to_vmem [thread:$0]  %s692_s0, 128, %s17_s10, [#allocation3]  }
  0x13   :  { %s508_s25 = scalar_lea.hbm %s693_s1, 2048 }
  0x14   :  { %p509_p8 = scmp.ne.s32.totalorder %s693_s1, %s508_s25  ;;  %p512_p9 = scmp.lt.u32.totalorder %s508_s25, %s693_s1 }
  0x16   :  { %p514_p10 = pnand %p512_p9, %p509_p8 }
  0x18   :  { %517 = shalt.err (!%p514_p10)
}
  0x19   :  { %s518_s30 = scalar_lea.vmem %s592_s12, 2048  ;;  %p523_p12 = scmp.lt.s32.totalorder %s592_s12, %s592_s12 }
  0x1a   :  { %p519_p11 = scmp.ne.s32.totalorder %s592_s12, %s518_s30  ;;  %p524_p13 = scmp.lt.s32.totalorder %s518_s30, %s518_s30 }
  0x1c   :  { %p525_p0 = por %p524_p13, %p523_p12 }
  0x1e   :  { %p526_p1 = pnand %p525_p0, %p519_p11 }
  0x20   :  { %529 = shalt.err (!%p526_p1)
}
  0x21   :  { %s560_s0 = smov 64   ;;  %s561_s3 = smov 4  }
  0x22   :  { %31 = dma.hbm_to_vmem [thread:$0]  %s693_s1, 2048, %s592_s12, [#allocation6], %s560_s0, %s560_s0, %s561_s3  }
  0x23   :  { %552 = dma.done.wait [#allocation3], 128  }
  0x24   :  { %553 = vsyncadd [#allocation3], 4294967168 }
  0x25   :  { %554 = dma.done.wait [#allocation6], 2048  }
  0x26   :  { %555 = vsyncadd [#allocation6], 4294965248  ;;  %v562_v0 = vmov 2   ;;  %v563_v1 = vmov 0   ;;  %v39_v2 = vld [vmem:[#allocation2] sm:$0xff]  ;;  %v564_v3 = vmov 3   ;;  %v40_v30 = vlaneseq }
  0x27   :  { %458 = vset.pattern.permute.xlu1 %v562_v0  ;;  %456 = vset.pattern.permute.xlu0 %v563_v1  ;;  %v565_v4 = vmov 1   ;;  %v470_v5 = vld [vmem:[#allocation5 + $0x40] sm:$0xff]   ;;  %v566_v6 = vmov 4   ;;  %v567_v7 = vmov 5   ;;  %v472_v9 = vld [vmem:[#allocation5 + $0x48] sm:$0xff]   ;;  %v568_v11 = vmov 6  }
  0x28   :  { %66 = vperm.xlu1 %458, %v39_v2   ;;  %44 = vperm.xlu0 %456, %v39_v2   ;;  %v471_v8 = vld [vmem:[#allocation5] sm:$0xff]   ;;  %v473_v10 = vld [vmem:[#allocation5 + $0x8] sm:$0xff]   ;;  %v569_v12 = vmov 8   ;;  %v474_v13 = vld [vmem:[#allocation5 + $0x50] sm:$0xff]   ;;  %v570_v15 = vmov 7   ;;  %v571_v16 = vmov 11  }
  0x29   :  { %415 = vmatprep.subr.bf16.mxu0 %v470_v5  ;;  %v475_v14 = vld [vmem:[#allocation5 + $0x10] sm:$0xff]   ;;  %v476_v17 = vld [vmem:[#allocation5 + $0x58] sm:$0xff]   ;;  %v572_v19 = vmov 9   ;;  %v478_v20 = vld [vmem:[#allocation5 + $0x60] sm:$0xff]   ;;  %v573_v21 = vmov 12   ;;  %v574_v24 = vmov 10  }
  0x2a   :  { %416 = vmatpush3.bf16.msra.mxu0 %v471_v8  ;;  %v477_v18 = vld [vmem:[#allocation5 + $0x18] sm:$0xff]   ;;  %v479_v22 = vld [vmem:[#allocation5 + $0x20] sm:$0xff]   ;;  %v480_v23 = vld [vmem:[#allocation5 + $0x68] sm:$0xff]   ;;  %v623_v31 = vand.u32 127, %v40_v30  ;;  %v575_v35 = vmov 0.0   ;;  %s576_s1 = smov [#allocation7]  }
  0x2b   :  { %417 = vmatprep.subr.bf16.mxu0 %v472_v9  ;;  %v481_v25 = vld [vmem:[#allocation5 + $0x28] sm:$0xff]   ;;  %v482_v26 = vld [vmem:[#allocation5 + $0x70] sm:$0xff]   ;;  %v484_v28 = vld [vmem:[#allocation5 + $0x78] sm:$0xff]   ;;  %s363_s6 = sshll.u32 %s576_s1, 4  ;;  %s364_s6 = int_to_ptr.vmem [resolvable:$true] %s363_s6 }
  0x2c   :  { %459 = vset.pattern.permute.xlu1 %v564_v3  ;;  %457 = vset.pattern.permute.xlu0 %v565_v4  ;;  %v483_v27 = vld [vmem:[#allocation5 + $0x30] sm:$0xff]   ;;  %v485_v29 = vld [vmem:[#allocation5 + $0x38] sm:$0xff]   ;;  %v626_v32 = vadd.s32 128, %v623_v31  ;;  %s530_s7 = scalar_lea.vmem %s364_s6, 128  ;;  %p535_p3 = scmp.lt.s32.totalorder %s364_s6, %s364_s6 }
  0x2d   :  { %77 = vperm.xlu1 %459, %v39_v2   ;;  %55 = vperm.xlu0 %457, %v39_v2   ;;  %p531_p2 = scmp.ne.s32.totalorder %s364_s6, %s530_s7  ;;  %p536_p4 = scmp.lt.s32.totalorder %s530_s7, %s530_s7 }
  0x2e   :  { %418 = vmatpush3.bf16.msra.mxu0 %v473_v10 }
  0x2f   :  { %419 = vmatprep.subr.bf16.mxu0 %v474_v13  ;;  %p537_p5 = por %p536_p4, %p535_p3 }
  0x31   :  { %460 = vset.pattern.permute.xlu1 %v566_v6  ;;  %461 = vset.pattern.permute.xlu0 %v567_v7  ;;  %p538_p6 = pnand %p537_p5, %p531_p2 }
  0x32   :  { %88 = vperm.xlu1 %460, %v39_v2   ;;  %99 = vperm.xlu0 %461, %v39_v2  }
  0x33   :  { %420 = vmatpush3.bf16.msra.mxu0 %v475_v14 }
  0x34   :  { %421 = vmatprep.subr.bf16.mxu0 %v476_v17 }
  0x36   :  { %462 = vset.pattern.permute.xlu1 %v568_v11  ;;  %464 = vset.pattern.permute.xlu0 %v569_v12 }
  0x37   :  { %110 = vperm.xlu1 %462, %v39_v2   ;;  %132 = vperm.xlu0 %464, %v39_v2  }
  0x38   :  { %422 = vmatpush3.bf16.msra.mxu0 %v477_v18 }
  0x39   :  { %423 = vmatprep.subr.bf16.mxu0 %v478_v20 }
  0x3b   :  { %463 = vset.pattern.permute.xlu1 %v570_v15  ;;  %467 = vset.pattern.permute.xlu0 %v571_v16 }
  0x3c   :  { %121 = vperm.xlu1 %463, %v39_v2   ;;  %165 = vperm.xlu0 %467, %v39_v2  }
  0x3d   :  { %424 = vmatpush3.bf16.msra.mxu0 %v479_v22 }
  0x3e   :  { %425 = vmatprep.subr.bf16.mxu0 %v480_v23 }
  0x40   :  { %465 = vset.pattern.permute.xlu1 %v572_v19  ;;  %469 = vset.pattern.permute.xlu0 %v573_v21 }
  0x41   :  { %143 = vperm.xlu1 %465, %v39_v2   ;;  %426 = vmatpush3.bf16.msra.mxu0 %v481_v25 }
  0x42   :  { %427 = vmatprep.subr.bf16.mxu0 %v482_v26 }
  0x45   :  { %466 = vset.pattern.permute.xlu1 %v574_v24  ;;  %428 = vmatpush3.bf16.msra.mxu0 %v483_v27 }
  0x46   :  { %154 = vperm.xlu1 %466, %v39_v2   ;;  %429 = vmatprep.subr.bf16.mxu0 %v484_v28 }
  0x49   :  { %430 = vmatpush3.bf16.msra.mxu0 %v485_v29 }
  0x4a   :  { %468 = vset.pattern.permute.xlu1 %v573_v21 }
  0x4b   :  { %176 = vperm.xlu1 %468, %v39_v2  }
  0xa7   :  { %v67_v33 = vpop.permute.xlu1 %66  ;;  %v45_v34 = vpop.permute.xlu0 %44 }
  0xa8   :  { %vm46_vm0 = vcmp.eq.s32.totalorder %v45_v34, %v623_v31  ;;  %vm47_vm1 = vcmp.eq.s32.totalorder %v45_v34, %v626_v32  ;;  %vm68_vm2 = vcmp.eq.s32.totalorder %v67_v33, %v623_v31  ;;  %vm69_vm3 = vcmp.eq.s32.totalorder %v67_v33, %v626_v32 }
  0xa9   :  { %v373_v36 = vsel %vm46_vm0, 1.0, %v575_v35  ;;  %v374_v37 = vsel %vm47_vm1, 1.0, %v575_v35  ;;  %v377_v44 = vsel %vm68_vm2, 1.0, %v575_v35  ;;  %v378_v45 = vsel %vm69_vm3, 1.0, %v575_v35 }
  0xac   :  { %v78_v38 = vpop.permute.xlu1 %77  ;;  %v56_v39 = vpop.permute.xlu0 %55 }
  0xad   :  { %vm57_vm4 = vcmp.eq.s32.totalorder %v56_v39, %v623_v31  ;;  %vm58_vm5 = vcmp.eq.s32.totalorder %v56_v39, %v626_v32  ;;  %vm79_vm6 = vcmp.eq.s32.totalorder %v78_v38, %v623_v31  ;;  %vm80_vm7 = vcmp.eq.s32.totalorder %v78_v38, %v626_v32 }
  0xae   :  { %v375_v40 = vsel %vm57_vm4, 1.0, %v575_v35  ;;  %v376_v41 = vsel %vm58_vm5, 1.0, %v575_v35  ;;  %v379_v46 = vsel %vm79_vm6, 1.0, %v575_v35  ;;  %v380_v47 = vsel %vm80_vm7, 1.0, %v575_v35 }
  0xaf   :  { %v63_v42 = vadd.f32 %v375_v40, %v373_v36  ;;  %v64_v43 = vadd.f32 %v376_v41, %v374_v37 }
  0xb1   :  { %v74_v48 = vadd.f32 %v377_v44, %v63_v42  ;;  %v75_v49 = vadd.f32 %v378_v45, %v64_v43  ;;  %v89_v50 = vpop.permute.xlu1 %88  ;;  %v100_v51 = vpop.permute.xlu0 %99 }
  0xb2   :  { %vm90_vm8 = vcmp.eq.s32.totalorder %v89_v50, %v623_v31  ;;  %vm91_vm9 = vcmp.eq.s32.totalorder %v89_v50, %v626_v32  ;;  %vm101_vm10 = vcmp.eq.s32.totalorder %v100_v51, %v623_v31  ;;  %vm102_vm11 = vcmp.eq.s32.totalorder %v100_v51, %v626_v32 }
  0xb3   :  { %v85_v52 = vadd.f32 %v379_v46, %v74_v48  ;;  %v86_v53 = vadd.f32 %v380_v47, %v75_v49  ;;  %v381_v54 = vsel %vm90_vm8, 1.0, %v575_v35  ;;  %v382_v55 = vsel %vm91_vm9, 1.0, %v575_v35 }
  0xb4   :  { %v383_v58 = vsel %vm101_vm10, 1.0, %v575_v35  ;;  %v384_v59 = vsel %vm102_vm11, 1.0, %v575_v35 }
  0xb5   :  { %v96_v56 = vadd.f32 %v381_v54, %v85_v52  ;;  %v97_v57 = vadd.f32 %v382_v55, %v86_v53 }
  0xb6   :  { %v111_v60 = vpop.permute.xlu1 %110  ;;  %v133_v63 = vpop.permute.xlu0 %132 }
  0xb7   :  { %vm112_vm12 = vcmp.eq.s32.totalorder %v111_v60, %v623_v31  ;;  %vm113_vm13 = vcmp.eq.s32.totalorder %v111_v60, %v626_v32  ;;  %v107_v61 = vadd.f32 %v383_v58, %v96_v56  ;;  %v108_v62 = vadd.f32 %v384_v59, %v97_v57 }
  0xb8   :  { %v385_v0 = vsel %vm112_vm12, 1.0, %v575_v35  ;;  %v386_v1 = vsel %vm113_vm13, 1.0, %v575_v35  ;;  %vm134_vm14 = vcmp.eq.s32.totalorder %v133_v63, %v623_v31  ;;  %vm135_vm15 = vcmp.eq.s32.totalorder %v133_v63, %v626_v32 }
  0xb9   :  { %v118_v3 = vadd.f32 %v385_v0, %v107_v61  ;;  %v119_v4 = vadd.f32 %v386_v1, %v108_v62  ;;  %v389_v9 = vsel %vm134_vm14, 1.0, %v575_v35  ;;  %v390_v10 = vsel %vm135_vm15, 1.0, %v575_v35 }
  0xbb   :  { %v122_v2 = vpop.permute.xlu1 %121  ;;  %v166_v12 = vpop.permute.xlu0 %165 }
  0xbc   :  { %vm123_vm0 = vcmp.eq.s32.totalorder %v122_v2, %v623_v31  ;;  %vm124_vm1 = vcmp.eq.s32.totalorder %v122_v2, %v626_v32  ;;  %vm167_vm4 = vcmp.eq.s32.totalorder %v166_v12, %v623_v31  ;;  %vm168_vm5 = vcmp.eq.s32.totalorder %v166_v12, %v626_v32 }
  0xbd   :  { %v387_v5 = vsel %vm123_vm0, 1.0, %v575_v35  ;;  %v388_v6 = vsel %vm124_vm1, 1.0, %v575_v35  ;;  %v395_v22 = vsel %vm167_vm4, 1.0, %v575_v35  ;;  %v396_v23 = vsel %vm168_vm5, 1.0, %v575_v35 }
  0xbe   :  { %v129_v7 = vadd.f32 %v387_v5, %v118_v3  ;;  %v130_v8 = vadd.f32 %v388_v6, %v119_v4 }
  0xc0   :  { %v144_v11 = vpop.permute.xlu1 %143  ;;  %v140_v13 = vadd.f32 %v389_v9, %v129_v7  ;;  %v141_v14 = vadd.f32 %v390_v10, %v130_v8 }
  0xc1   :  { %vm145_vm2 = vcmp.eq.s32.totalorder %v144_v11, %v623_v31  ;;  %vm146_vm3 = vcmp.eq.s32.totalorder %v144_v11, %v626_v32 }
  0xc2   :  { %v391_v15 = vsel %vm145_vm2, 1.0, %v575_v35  ;;  %v392_v16 = vsel %vm146_vm3, 1.0, %v575_v35 }
  0xc3   :  { %v151_v18 = vadd.f32 %v391_v15, %v140_v13  ;;  %v152_v19 = vadd.f32 %v392_v16, %v141_v14 }
  0xc5   :  { %v155_v17 = vpop.permute.xlu1 %154 }
  0xc6   :  { %vm156_vm6 = vcmp.eq.s32.totalorder %v155_v17, %v623_v31  ;;  %vm157_vm7 = vcmp.eq.s32.totalorder %v155_v17, %v626_v32 }
  0xc7   :  { %v393_v20 = vsel %vm156_vm6, 1.0, %v575_v35  ;;  %v394_v21 = vsel %vm157_vm7, 1.0, %v575_v35 }
  0xc8   :  { %v162_v24 = vadd.f32 %v393_v20, %v151_v18  ;;  %v163_v25 = vadd.f32 %v394_v21, %v152_v19 }
  0xca   :  { %v173_v26 = vadd.f32 %v395_v22, %v162_v24  ;;  %v177_v27 = vpop.permute.xlu1 %176  ;;  %v174_v28 = vadd.f32 %v396_v23, %v163_v25 }
  0xcb   :  { %vm178_vm8 = vcmp.eq.s32.totalorder %v177_v27, %v623_v31  ;;  %vm179_vm9 = vcmp.eq.s32.totalorder %v177_v27, %v626_v32 }
  0xcc   :  { %v397_v29 = vsel %vm178_vm8, 1.0, %v575_v35  ;;  %v398_v30 = vsel %vm179_vm9, 1.0, %v575_v35 }
  0xcd   :  { %v184_v33 = vadd.f32 %v397_v29, %v173_v26  ;;  %v185_v34 = vadd.f32 %v398_v30, %v174_v28 }
  0xcf   :  { %v186_v36 = vpack.c.bf16 %v184_v33, %v184_v33  ;;  %v187_v37 = vpack.c.bf16 %v185_v34, %v185_v34 }
  0xd1   :  { %348 = vmatprep.mubr.bf16.mxu0 %v187_v37 }
  0xd2   :  { %349 = vmatmul.mubr.bf16.vlgmr.msra.gmra.mrb[0].mxu0 %v186_v36 }
 0x1a5   :  { %v431_v38 = vpop.f32.mrb[0].mxu0 }
 0x1a6   :  { %v432_v39 = vpop.f32.mrb[1].mxu0 }
 0x1a7   :  { %v433_v40 = vadd.f32 %v432_v39, %v431_v38  ;;  %v434_v41 = vpop.f32.mrb[2].mxu0 }
 0x1a8   :  { %v435_v31 = vpop.f32.mrb[3].mxu0 }
 0x1a9   :  { %356 = vst [vmem:[#allocation7] sm:$0xff] %v433_v40 }
 0x1aa   :  { %541 = shalt.err (!%p538_p6)
}
 0x1ab   :  { %s542_s10 = scalar_lea.hbm %s694_s2, 128 }
 0x1ac   :  { %p543_p7 = scmp.ne.s32.totalorder %s694_s2, %s542_s10  ;;  %p546_p8 = scmp.lt.u32.totalorder %s542_s10, %s694_s2 }
 0x1ae   :  { %p548_p9 = pnand %p546_p8, %p543_p7 }
 0x1b0   :  { %551 = shalt.err (!%p548_p9)
}
 0x1b1   :  { %366 = dma.vmem_to_hbm [thread:$0]  %s364_s6, 128, %s694_s2, [#allocation4]  }
 0x1b2   :  { %556 = dma.done.wait [#allocation4], 128  }
 0x1b3   :  { %557 = vsyncadd [#allocation4], 4294967168 }
 0x1b4   :  { %370 = vsyncpa [#allocation3], 1 }
 0x1b5   :  { %371 = vsyncpa [#allocation6], 1 }
 0x1b6   :  { %372 = vsyncpa [#allocation4], 1 }

</bundles_post_ra>
